<compile_context>
chip_gen: v5e
topology: v5e:2x2
jax: 0.10.0
libtpu: 0.0.40
codegen_flags: <defaults>
</compile_context>

<pallas_src>
import jax
import jax.numpy as jnp
from jax import lax
from jax.experimental import pallas as pl
from jax.experimental.pallas import tpu as pltpu

NEGATIVE_SLOPE = 0.01  # LeakyReLU negative_slope


def _round_up(n, m):
    return ((n + m - 1) // m) * m


def _leaky_relu(h):
    # Valid for 0 <= slope < 1: max(h, slope*h) == leaky_relu(h).  mul+max (2 VALU ops).
    return jnp.maximum(h, NEGATIVE_SLOPE * h)


def _make_mlp_kernel(act_dtype):
    def kernel(x_ref, w1_ref, w2_ref, misc_ref, out_ref):
        # x_ref   : (block_b, F)  natural (batch, feature) layout, no wrapper transpose
        # w1_ref  : (H, F) = W1^T          w2_ref: (H, H) = W2^T
        # misc_ref: (H, 4)  col0=b1, col1=b2, col2=w_out, [0,3]=b_out
        # out_ref : (1, block_b)  lane-dense output tile
        x = x_ref[...]
        w1 = w1_ref[...].astype(x.dtype)

        # Layer 1: contract over features; batch lands on the lane axis (H, block_b).
        h = lax.dot_general(w1, x, (((1,), (1,)), ((), ())),
                            preferred_element_type=jnp.float32)
        b1 = misc_ref[:, 0:1].astype(act_dtype)
        h = _leaky_relu(h.astype(act_dtype) + b1)

        # Layer 2 (f32 accumulation on the MXU, elementwise in act_dtype).
        h = jnp.dot(w2_ref[...].astype(act_dtype), h,
                    preferred_element_type=jnp.float32)             # (H, block_b)
        b2 = misc_ref[:, 1:2].astype(act_dtype)
        h = _leaky_relu(h.astype(act_dtype) + b2)

        # Output layer: (H, 1) weights -> VPU multiply + XLU sublane reduce.
        wo = misc_ref[:, 2:3]                                        # (H, 1) f32
        bo = misc_ref[0:1, 3:4]                                      # (1, 1) f32
        o = jnp.sum(h.astype(jnp.float32) * wo, axis=0, keepdims=True) + bo
        out_ref[...] = o.astype(out_ref.dtype)

    return kernel


def pairwise_model_forward(x, params, *, block_b=None, act_dtype=jnp.float32):
    """edge_weights = squeeze(MLPLayer(x)).  x: (B, n_features) -> (B,).

    x may be f32 or bf16 (bf16 halves the only large HBM stream); act_dtype=bf16
    keeps inter-layer elementwise work packed (use on v6e/v7x; f32 on v5e).
    """
    B, F = x.shape
    w1, b1, w2, b2, wo, bo = params
    H = w1.shape[1]

    # One-time layout plumbing on the tiny parameter tensors (negligible HBM):
    # weights pre-transposed for batch-on-lanes matmuls; the four small vectors
    # packed into a single (H, 4) tile so they ride one DMA / VMEM tile.
    w1_t = w1.T.astype(jnp.float32)                                  # (H, F)
    w2_t = w2.T.astype(jnp.float32)                                  # (H, H)
    misc = jnp.zeros((H, 4), jnp.float32)
    misc = misc.at[:, 0].set(jnp.reshape(b1, (H,)).astype(jnp.float32))
    misc = misc.at[:, 1].set(jnp.reshape(b2, (H,)).astype(jnp.float32))
    misc = misc.at[:, 2].set(jnp.reshape(wo, (H,)).astype(jnp.float32))
    misc = misc.at[0, 3].set(jnp.reshape(bo, ()).astype(jnp.float32))

    # Batch tiling: batch is the lane width of every intermediate inside the kernel.
    if block_b is None:
        cap = 65536 if x.dtype == jnp.bfloat16 else 32768
        if B <= 128:
            block_b = _round_up(B, 8)             # single grid step, tiny batch
        else:
            # >= 2 grid steps so both v7x TensorCores get work; big blocks
            # amortize the ~0.35 us per-grid-step overhead.
            block_b = min(_round_up(pl.cdiv(B, 2), 128), cap)
    else:
        # Multi-step grids need a 128-multiple lane block for the output tile.
        block_b = _round_up(block_b, 128) if block_b < B else _round_up(block_b, 8)

    grid_b = pl.cdiv(B, block_b)
    b_pad = grid_b * block_b                       # output allocation only; x is NOT padded

    # Raise the scoped-VMEM limit only when the big-block path actually needs it
    # (x double buffer + (H, block_b) f32 intermediates); 48 MiB fits v5e/v6e/v7x.
    vmem_limit = 48 * 1024 * 1024 if block_b >= 16384 else None

    out = pl.pallas_call(
        _make_mlp_kernel(act_dtype),
        out_shape=jax.ShapeDtypeStruct((1, b_pad), jnp.float32),
        grid_spec=pltpu.PrefetchScalarGridSpec(
            num_scalar_prefetch=0,
            grid=(grid_b,),
            in_specs=[
                pl.BlockSpec((block_b, F), lambda i: (i, 0)),  # x tile, natural layout
                pl.BlockSpec((H, F), lambda i: (0, 0)),        # W1^T (resident)
                pl.BlockSpec((H, H), lambda i: (0, 0)),        # W2^T (resident)
                pl.BlockSpec((H, 4), lambda i: (0, 0)),        # packed b1|b2|w_out|b_out
            ],
            out_specs=pl.BlockSpec((1, block_b), lambda i: (0, i)),  # lane-dense output
        ),
        compiler_params=pltpu.CompilerParams(
            dimension_semantics=("parallel",),
            vmem_limit_bytes=vmem_limit,
        ),
    )(x, w1_t, w2_t, misc)

    # torch.squeeze(edge_weights): drop the singleton dim, strip the boundary-block tail.
    return out[0, :B]


def init_params(key, n_features, hidden_dim):
    """Deterministic init of the MLPLayer parameters (2 hidden layers + output)."""
    k1, k2, k3, k4, k5, k6 = jax.random.split(key, 6)
    s1 = 1.0 / jnp.sqrt(n_features)
    s2 = 1.0 / jnp.sqrt(hidden_dim)
    w1 = jax.random.uniform(k1, (n_features, hidden_dim), jnp.float32, -s1, s1)
    b1 = jax.random.uniform(k2, (1, hidden_dim), jnp.float32, -s1, s1)
    w2 = jax.random.uniform(k3, (hidden_dim, hidden_dim), jnp.float32, -s2, s2)
    b2 = jax.random.uniform(k4, (1, hidden_dim), jnp.float32, -s2, s2)
    wo = jax.random.uniform(k5, (hidden_dim, 1), jnp.float32, -s2, s2)
    bo = jax.random.uniform(k6, (1, 1), jnp.float32, -s2, s2)
    return (w1, b1, w2, b2, wo, bo)


def _reference(x, params):
    w1, b1, w2, b2, wo, bo = params
    hp = lax.Precision.HIGHEST
    h = jax.nn.leaky_relu(jnp.dot(x, w1, precision=hp) + b1.reshape(1, -1), NEGATIVE_SLOPE)
    h = jax.nn.leaky_relu(jnp.dot(h, w2, precision=hp) + b2.reshape(1, -1), NEGATIVE_SLOPE)
    return jnp.squeeze(jnp.dot(h, wo, precision=hp) + bo.reshape(1, -1), axis=-1)


if __name__ == "__main__":
    n_features = 32
    hidden_dim = 32
    batch = 128  # small test shape -> single grid step

    key = jax.random.PRNGKey(0)
    kx, kp = jax.random.split(key)
    x = jax.random.normal(kx, (batch, n_features), jnp.float32)
    params = init_params(kp, n_features, hidden_dim)

    # f32 path (single grid step).  Tolerance allows for MXU f32-matmul pass decomposition.
    edge_weights = jax.block_until_ready(pairwise_model_forward(x, params))
    ref = _reference(x, params)
    assert edge_weights.shape == (batch,)
    assert jnp.allclose(edge_weights, ref, atol=5e-3, rtol=5e-3), "mismatch vs reference"

    # Multi-tile path: non-multiple batch -> boundary (partial) last block, no wrapper pad.
    batch2 = 300
    x2 = jax.random.normal(kx, (batch2, n_features), jnp.float32)
    ew2 = jax.block_until_ready(pairwise_model_forward(x2, params, block_b=128))
    assert ew2.shape == (batch2,)
    assert jnp.allclose(ew2, _reference(x2, params), atol=5e-3, rtol=5e-3), "mismatch (tiled)"

    # bf16-streamed x (producer-side cast) + packed bf16 elementwise, f32 MXU accumulation.
    x_bf16 = x.astype(jnp.bfloat16)
    ew3 = jax.block_until_ready(
        pairwise_model_forward(x_bf16, params, act_dtype=jnp.bfloat16))
    assert ew3.shape == (batch,)
    assert jnp.allclose(ew3, ref, atol=5e-2, rtol=5e-2), "mismatch (bf16 path)"

    print("KERNEL_OK")
</pallas_src>

<mosaic_0001>
module attributes {stable_mosaic.version = 11 : i64} {
  func.func @kernel(%arg0: i32, %arg1: memref<128x32xf32, #tpu.memory_space<vmem>>, %arg2: memref<32x32xf32, #tpu.memory_space<vmem>>, %arg3: memref<32x32xf32, #tpu.memory_space<vmem>>, %arg4: memref<32x4xf32, #tpu.memory_space<vmem>>, %arg5: memref<1x128xf32, #tpu.memory_space<vmem>>) attributes {dimension_semantics = [#tpu.dimension_semantics<parallel>], iteration_bounds = array<i64: 1>, scalar_prefetch = 0 : i64, scratch_operands = 0 : i64, tpu.core_type = #tpu.core_type<tc>, window_params = [{transform_indices = @transform_0, window_bounds = array<i64: 128, 32>}, {pipeline_mode = #tpu.pipeline_mode<synchronous>, transform_indices = @transform_1, window_bounds = array<i64: 32, 32>}, {pipeline_mode = #tpu.pipeline_mode<synchronous>, transform_indices = @transform_2, window_bounds = array<i64: 32, 32>}, {pipeline_mode = #tpu.pipeline_mode<synchronous>, transform_indices = @transform_3, window_bounds = array<i64: 32, 4>}, {transform_indices = @transform_4, window_bounds = array<i64: 1, 128>}]} {
    %c0 = arith.constant 0 : index
    %c0_0 = arith.constant 0 : index
    %0 = vector.load %arg1[%c0, %c0_0] : memref<128x32xf32, #tpu.memory_space<vmem>>, vector<128x32xf32>
    %c0_1 = arith.constant 0 : index
    %c0_2 = arith.constant 0 : index
    %1 = vector.load %arg2[%c0_1, %c0_2] : memref<32x32xf32, #tpu.memory_space<vmem>>, vector<32x32xf32>
    %cst = arith.constant dense<0.000000e+00> : vector<32x128xf32>
    %2 = tpu.matmul %1, %0, %cst {dimension_numbers = #tpu.dot_dimension_numbers<[1], [1], [0], [0], [0, 0, 1, 0], [], []>} : vector<32x32xf32>, vector<128x32xf32>, vector<32x128xf32> -> vector<32x128xf32>
    %c0_3 = arith.constant 0 : index
    %c0_4 = arith.constant 0 : index
    %3 = vector.load %arg4[%c0_3, %c0_4] : memref<32x4xf32, #tpu.memory_space<vmem>>, vector<32x1xf32>
    %4 = vector.broadcast %3 : vector<32x1xf32> to vector<32x128xf32>
    %5 = arith.addf %2, %4 : vector<32x128xf32>
    %cst_5 = arith.constant 0.00999999977 : f32
    %6 = vector.broadcast %cst_5 : f32 to vector<32x128xf32>
    %7 = arith.mulf %6, %5 : vector<32x128xf32>
    %8 = arith.maximumf %5, %7 : vector<32x128xf32>
    %c0_6 = arith.constant 0 : index
    %c0_7 = arith.constant 0 : index
    %9 = vector.load %arg3[%c0_6, %c0_7] : memref<32x32xf32, #tpu.memory_space<vmem>>, vector<32x32xf32>
    %cst_8 = arith.constant dense<0.000000e+00> : vector<32x128xf32>
    %10 = tpu.matmul %9, %8, %cst_8 {dimension_numbers = #tpu.dot_dimension_numbers<[1], [0], [0], [1], [0, 0, 1, 1], [], []>} : vector<32x32xf32>, vector<32x128xf32>, vector<32x128xf32> -> vector<32x128xf32>
    %c0_9 = arith.constant 0 : index
    %c1 = arith.constant 1 : index
    %11 = vector.load %arg4[%c0_9, %c1] : memref<32x4xf32, #tpu.memory_space<vmem>>, vector<32x1xf32>
    %12 = vector.broadcast %11 : vector<32x1xf32> to vector<32x128xf32>
    %13 = arith.addf %10, %12 : vector<32x128xf32>
    %cst_10 = arith.constant 0.00999999977 : f32
    %14 = vector.broadcast %cst_10 : f32 to vector<32x128xf32>
    %15 = arith.mulf %14, %13 : vector<32x128xf32>
    %16 = arith.maximumf %13, %15 : vector<32x128xf32>
    %c0_11 = arith.constant 0 : index
    %c2 = arith.constant 2 : index
    %17 = vector.load %arg4[%c0_11, %c2] : memref<32x4xf32, #tpu.memory_space<vmem>>, vector<32x1xf32>
    %c0_12 = arith.constant 0 : index
    %c3 = arith.constant 3 : index
    %18 = vector.load %arg4[%c0_12, %c3] : memref<32x4xf32, #tpu.memory_space<vmem>>, vector<1x1xf32>
    %19 = vector.broadcast %17 : vector<32x1xf32> to vector<32x128xf32>
    %20 = arith.mulf %16, %19 : vector<32x128xf32>
    %cst_13 = arith.constant dense<0.000000e+00> : vector<128xf32>
    %21 = vector.multi_reduction <add>, %20, %cst_13 [0] : vector<32x128xf32> to vector<128xf32>
    %22 = vector.shape_cast %21 : vector<128xf32> to vector<1x128xf32>
    %23 = vector.broadcast %18 : vector<1x1xf32> to vector<1x128xf32>
    %24 = arith.addf %22, %23 : vector<1x128xf32>
    %c0_14 = arith.constant 0 : index
    %c0_15 = arith.constant 0 : index
    %25 = vector.load %arg5[%c0_14, %c0_15] : memref<1x128xf32, #tpu.memory_space<vmem>>, vector<1x128xf32>
    tpu.vector_store %arg5[%c0_14, %c0_15], %24 {strides = array<i32>} : memref<1x128xf32, #tpu.memory_space<vmem>>, vector<1x128xf32>,
    return
  }
  func.func @transform_0(%arg0: i32) -> (i32, i32) {
    %c0_i32 = arith.constant 0 : i32
    %c0_i32_0 = arith.constant 0 : i32
    return %arg0, %c0_i32 : i32, i32
  }
  func.func @transform_1(%arg0: i32) -> (i32, i32) {
    %c0_i32 = arith.constant 0 : i32
    %c0_i32_0 = arith.constant 0 : i32
    %c0_i32_1 = arith.constant 0 : i32
    return %c0_i32, %c0_i32_0 : i32, i32
  }
  func.func @transform_2(%arg0: i32) -> (i32, i32) {
    %c0_i32 = arith.constant 0 : i32
    %c0_i32_0 = arith.constant 0 : i32
    %c0_i32_1 = arith.constant 0 : i32
    return %c0_i32, %c0_i32_0 : i32, i32
  }
  func.func @transform_3(%arg0: i32) -> (i32, i32) {
    %c0_i32 = arith.constant 0 : i32
    %c0_i32_0 = arith.constant 0 : i32
    %c0_i32_1 = arith.constant 0 : i32
    return %c0_i32, %c0_i32_0 : i32, i32
  }
  func.func @transform_4(%arg0: i32) -> (i32, i32) {
    %c0_i32 = arith.constant 0 : i32
    %c0_i32_0 = arith.constant 0 : i32
    return %c0_i32, %arg0 : i32, i32
  }
}

</mosaic_0001>

<bundles_post_ra>
// kernel: tpu_custom_call.1
= control target key start
LH: loop header
LB: loop body
LE: loop exit
PB: predicated region body
PF: predicated region fallthrough
CT: control target
= control target key end

     0   :  { %vm62_vm0 = vcmask 261120   ;;  %s565_s0 = inlined_call_operand.vmem [shape: f32[128,32], index: 0, kind: input, shape index: {}]   ;;  %s566_s1 = inlined_call_operand.vmem [shape: f32[32,32], index: 1, kind: input, shape index: {}]   ;;  %s567_s2 = inlined_call_operand.vmem [shape: f32[32,32], index: 2, kind: input, shape index: {}]   ;;  %s568_s3 = inlined_call_operand.vmem [shape: f32[32,4], index: 3, kind: input, shape index: {}]   ;;  %s569_s4 = inlined_call_operand.hbm [shape: f32[1,128], index: 4, kind: output, shape index: {}]  }
   0x1   :  { %v33_v0 = vld [vmem:[%s565_s0 + $0x78] sm:$0xff]  ;;  %v32_v1 = vld [vmem:[%s565_s0 + $0x70] sm:$0xff] }
   0x2   :  { %307 = vmatpush.xpose.msk.msra.mxu3 %vm62_vm0, %v33_v0  ;;  %306 = vmatpush.xpose.msk.msra.mxu2 %vm62_vm0, %v33_v0 }
   0x3   :  { %282 = vmatpush.xpose.msk.msra.mxu0 %vm62_vm0, %v33_v0 }
   0x4   :  { %9 = vsyncpa [#allocation3], 0  ;;  %v31_v2 = vld [vmem:[%s565_s0 + $0x68] sm:$0xff]  ;;  %v30_v3 = vld [vmem:[%s565_s0 + $0x60] sm:$0xff]  ;;  %v379_v10 = vmov 0   ;;  %v380_v27 = vmov 1  }
   0x5   :  { %v29_v4 = vld [vmem:[%s565_s0 + $0x58] sm:$0xff]  ;;  %v28_v5 = vld [vmem:[%s565_s0 + $0x50] sm:$0xff]  ;;  %v27_v6 = vld [vmem:[%s565_s0 + $0x48] sm:$0xff]  ;;  %343 = vset.pattern.permute.xlu0 %v379_v10  ;;  %344 = vset.pattern.permute.xlu1 %v379_v10  ;;  %v381_v35 = vmov 2   ;;  %v382_v47 = vmov 3   ;;  %s273_s21 = sshll.u32 %s569_s4, 4  ;;  %s274_s21 = int_to_ptr.hbm [resolvable:$true] %s273_s21 }
   0x6   :  { %309 = vmatpush.xpose.msk.msra.mxu3 %vm62_vm0, %v32_v1  ;;  %308 = vmatpush.xpose.msk.msra.mxu2 %vm62_vm0, %v32_v1  ;;  %v26_v7 = vld [vmem:[%s565_s0 + $0x40] sm:$0xff]  ;;  %v25_v8 = vld [vmem:[%s565_s0 + $0x38] sm:$0xff]  ;;  %v24_v9 = vld [vmem:[%s565_s0 + $0x30] sm:$0xff] }
   0x7   :  { %283 = vmatpush.xpose.msk.msra.mxu0 %vm62_vm0, %v32_v1  ;;  %v23_v11 = vld [vmem:[%s565_s0 + $0x28] sm:$0xff]  ;;  %v475_v12 = vld [vmem:[%s568_s3 + $0x18] sm:$0xff]  ;;  %v22_v14 = vld [vmem:[%s565_s0 + $0x20] sm:$0xff]  ;;  %345 = vset.pattern.permute.xlu2 %v380_v27 }
   0x8   :  { %v39_v13 = vld [vmem:[%s568_s3 + $0x8] sm:$0xff]  ;;  %59 = vperm.xlu0 %343, %v475_v12   ;;  %v21_v15 = vld [vmem:[%s565_s0 + $0x18] sm:$0xff]  ;;  %v496_v16 = vld [vmem:[%s568_s3 + $0x10] sm:$0xff] }
   0x9   :  { %49 = vperm.xlu1 %344, %v39_v13   ;;  %v38_v17 = vld [vmem:[%s568_s3] sm:$0xff]  ;;  %v20_v18 = vld [vmem:[%s565_s0 + $0x10] sm:$0xff]  ;;  %v19_v19 = vld [vmem:[%s565_s0 + $0x8] sm:$0xff] }
   0xa   :  { %311 = vmatpush.xpose.msk.msra.mxu3 %vm62_vm0, %v31_v2  ;;  %310 = vmatpush.xpose.msk.msra.mxu2 %vm62_vm0, %v31_v2  ;;  %v18_v20 = vld [vmem:[%s565_s0] sm:$0xff]  ;;  %v36_v21 = vld [vmem:[%s566_s1 + $0x10] sm:$0xff]  ;;  %v35_v22 = vld [vmem:[%s566_s1 + $0x8] sm:$0xff] }
   0xb   :  { %284 = vmatpush.xpose.msk.msra.mxu0 %vm62_vm0, %v31_v2  ;;  %v34_v23 = vld [vmem:[%s566_s1] sm:$0xff]  ;;  %v37_v24 = vld [vmem:[%s566_s1 + $0x18] sm:$0xff]  ;;  %165 = vperm.xlu2 %345, %v38_v17   ;;  %v161_v50 = vld [vmem:[%s567_s2 + $0x8] sm:$0xff] }
   0xc   :  { %v229_v45 = vld [vmem:[%s568_s3] sm:$0x1]  ;;  %v162_v51 = vld [vmem:[%s567_s2 + $0x10] sm:$0xff]  ;;  %v163_v52 = vld [vmem:[%s567_s2 + $0x18] sm:$0xff] }
   0xd   :  { %v160_v49 = vld [vmem:[%s567_s2] sm:$0xff]  ;;  %s383_s2 = smov [#allocation2]  }
   0xe   :  { %313 = vmatpush.xpose.msk.msra.mxu3 %vm62_vm0, %v30_v3  ;;  %312 = vmatpush.xpose.msk.msra.mxu2 %vm62_vm0, %v30_v3  ;;  %s271_s18 = sshll.u32 %s383_s2, 4  ;;  %s272_s18 = int_to_ptr.vmem [resolvable:$true] %s271_s18 }
   0xf   :  { %285 = vmatpush.xpose.msk.msra.mxu0 %vm62_vm0, %v30_v3 }
  0x10   :  { %54 = vperm.xlu0 %343, %v496_v16  }
  0x11   :  { %44 = vperm.xlu1 %344, %v38_v17  }
  0x12   :  { %315 = vmatpush.xpose.msk.msra.mxu3 %vm62_vm0, %v29_v4  ;;  %314 = vmatpush.xpose.msk.msra.mxu2 %vm62_vm0, %v29_v4 }
  0x13   :  { %286 = vmatpush.xpose.msk.msra.mxu0 %vm62_vm0, %v29_v4  ;;  %169 = vperm.xlu2 %345, %v39_v13  }
  0x16   :  { %317 = vmatpush.xpose.msk.msra.mxu3 %vm62_vm0, %v28_v5  ;;  %316 = vmatpush.xpose.msk.msra.mxu2 %vm62_vm0, %v28_v5 }
  0x17   :  { %287 = vmatpush.xpose.msk.msra.mxu0 %vm62_vm0, %v28_v5 }
  0x18   :  { %346 = vset.pattern.permute.xlu0 %v380_v27 }
  0x19   :  { %347 = vset.pattern.permute.xlu1 %v380_v27  ;;  %173 = vperm.xlu0 %346, %v496_v16  }
  0x1a   :  { %319 = vmatpush.xpose.msk.msra.mxu3 %vm62_vm0, %v27_v6  ;;  %318 = vmatpush.xpose.msk.msra.mxu2 %vm62_vm0, %v27_v6 }
  0x1b   :  { %288 = vmatpush.xpose.msk.msra.mxu0 %vm62_vm0, %v27_v6  ;;  %177 = vperm.xlu1 %347, %v475_v12  }
  0x1c   :  { %348 = vset.pattern.permute.xlu2 %v381_v35 }
  0x1d   :  { %231 = vperm.xlu2 %348, %v38_v17  }
  0x1e   :  { %321 = vmatpush.xpose.msk.msra.mxu3 %vm62_vm0, %v26_v7  ;;  %320 = vmatpush.xpose.msk.msra.mxu2 %vm62_vm0, %v26_v7 }
  0x1f   :  { %289 = vmatpush.xpose.msk.msra.mxu0 %vm62_vm0, %v26_v7 }
  0x21   :  { %350 = vset.pattern.permute.xlu0 %v381_v35 }
  0x22   :  { %323 = vmatpush.xpose.msk.msra.mxu3 %vm62_vm0, %v25_v8  ;;  %322 = vmatpush.xpose.msk.msra.mxu2 %vm62_vm0, %v25_v8 }
  0x23   :  { %290 = vmatpush.xpose.msk.msra.mxu0 %vm62_vm0, %v25_v8  ;;  %349 = vset.pattern.permute.xlu1 %v381_v35 }
  0x24   :  { %235 = vperm.xlu1 %349, %v39_v13   ;;  %243 = vperm.xlu0 %350, %v475_v12  }
  0x25   :  { %239 = vperm.xlu2 %348, %v496_v16  }
  0x26   :  { %325 = vmatpush.xpose.msk.msra.mxu3 %vm62_vm0, %v24_v9  ;;  %324 = vmatpush.xpose.msk.msra.mxu2 %vm62_vm0, %v24_v9 }
  0x27   :  { %291 = vmatpush.xpose.msk.msra.mxu0 %vm62_vm0, %v24_v9 }
  0x2a   :  { %327 = vmatpush.xpose.msk.msra.mxu3 %vm62_vm0, %v23_v11  ;;  %326 = vmatpush.xpose.msk.msra.mxu2 %vm62_vm0, %v23_v11 }
  0x2b   :  { %292 = vmatpush.xpose.msk.msra.mxu0 %vm62_vm0, %v23_v11 }
  0x2c   :  { %351 = vset.pattern.permute.xlu1 %v382_v47  ;;  %352 = vset.pattern.permute.xlu0 %v382_v47 }
  0x2d   :  { %261 = vperm.xlu1 %351, %v229_v45  }
  0x2e   :  { %329 = vmatpush.xpose.msk.msra.mxu3 %vm62_vm0, %v22_v14  ;;  %328 = vmatpush.xpose.msk.msra.mxu2 %vm62_vm0, %v22_v14 }
  0x2f   :  { %293 = vmatpush.xpose.msk.msra.mxu0 %vm62_vm0, %v22_v14 }
  0x32   :  { %331 = vmatpush.xpose.msk.msra.mxu3 %vm62_vm0, %v21_v15  ;;  %330 = vmatpush.xpose.msk.msra.mxu2 %vm62_vm0, %v21_v15 }
  0x33   :  { %294 = vmatpush.xpose.msk.msra.mxu0 %vm62_vm0, %v21_v15 }
  0x36   :  { %333 = vmatpush.xpose.msk.msra.mxu3 %vm62_vm0, %v20_v18  ;;  %332 = vmatpush.xpose.msk.msra.mxu2 %vm62_vm0, %v20_v18 }
  0x37   :  { %295 = vmatpush.xpose.msk.msra.mxu0 %vm62_vm0, %v20_v18 }
  0x3a   :  { %335 = vmatpush.xpose.msk.msra.mxu3 %vm62_vm0, %v19_v19  ;;  %334 = vmatpush.xpose.msk.msra.mxu2 %vm62_vm0, %v19_v19 }
  0x3b   :  { %296 = vmatpush.xpose.msk.msra.mxu0 %vm62_vm0, %v19_v19 }
  0x3e   :  { %337 = vmatpush.xpose.msk.msra.mxu3 %vm62_vm0, %v18_v20  ;;  %336 = vmatpush.xpose.msk.msra.mxu2 %vm62_vm0, %v18_v20 }
  0x3f   :  { %297 = vmatpush.xpose.msk.msra.mxu0 %vm62_vm0, %v18_v20 }
  0x41   :  { %300 = vmatmul.msk.f32.vlgmr.msra.gmra.mxu3 %vm62_vm0, %v36_v21  ;;  %299 = vmatmul.msk.f32.vlgmr.msra.gmra.mxu2 %vm62_vm0, %v35_v22 }
  0x42   :  { %298 = vmatmul.msk.f32.vlgmr.msra.gmra.mxu0 %vm62_vm0, %v34_v23 }
  0x49   :  { %301 = vmatmul.msk.f32.gmra.mxu3 %vm62_vm0, %v37_v24 }
  0x65   :  { %v166_v53 = vpop.permute.xlu2 %165 }
  0x6d   :  { %v170_v55 = vpop.permute.xlu2 %169 }
  0x77   :  { %v232_v0 = vpop.permute.xlu2 %231 }
  0x7a   :  { %v60_v25 = vpop.permute.xlu0 %59 }
  0x7b   :  { %v50_v26 = vpop.permute.xlu1 %49 }
  0x7f   :  { %v240_v10 = vpop.permute.xlu2 %239 }
  0x82   :  { %v55_v29 = vpop.permute.xlu0 %54 }
  0x83   :  { %v45_v32 = vpop.permute.xlu1 %44 }
  0x8b   :  { %v174_v59 = vpop.permute.xlu0 %173 }
  0x8d   :  { %v178_v57 = vpop.permute.xlu1 %177 }
  0x96   :  { %v236_v4 = vpop.permute.xlu1 %235  ;;  %v244_v14 = vpop.permute.xlu0 %243 }
  0xbf   :  { %v140_v33 = vpop.f32.mrf.mxu0 }
  0xc0   :  { %v141_v39 = vadd.f32 %v140_v33, %v45_v32 }
  0xc2   :  { %v152_v43 = vmul.f32 0.01, %v141_v39 }
  0xc4   :  { %v146_v28 = vpop.f32.mrf.mxu3  ;;  %v143_v30 = vpop.f32.mrf.mxu2  ;;  %v156_v48 = vmax.f32 %v141_v39, %v152_v43 }
  0xc5   :  { %v147_v31 = vadd.f32 %v146_v28, %v55_v29  ;;  %v144_v36 = vadd.f32 %v143_v30, %v50_v26 }
  0xc7   :  { %v154_v38 = vmul.f32 0.01, %v147_v31  ;;  %v153_v41 = vmul.f32 0.01, %v144_v36 }
  0xc9   :  { %v158_v44 = vmax.f32 %v147_v31, %v154_v38  ;;  %v157_v46 = vmax.f32 %v144_v36, %v153_v41 }
  0xcc   :  { %v149_v34 = vpop.f32.mrf.mxu3 }
  0xcd   :  { %v150_v37 = vadd.f32 %v149_v34, %v60_v25  ;;  %v262_v25 = vpop.permute.xlu1 %261 }
  0xcf   :  { %v155_v40 = vmul.f32 0.01, %v150_v37 }
  0xd1   :  { %v159_v42 = vmax.f32 %v150_v37, %v155_v40 }
  0xd3   :  { %204 = vmatpush.msra.mxu1 %v159_v42 }
  0xd5   :  { %205 = vmatpush.msra.mxu1 %v158_v44 }
  0xd7   :  { %206 = vmatpush.msra.mxu1 %v157_v46 }
  0xd9   :  { %207 = vmatpush.msra.mxu1 %v156_v48 }
  0xda   :  { %302 = vmatmul.msk.f32.vlgmr.msra.gmra.mxu1 %vm62_vm0, %v160_v49 }
  0xe2   :  { %303 = vmatmul.msk.f32.gmra.mxu1 %vm62_vm0, %v161_v50 }
  0xea   :  { %304 = vmatmul.msk.f32.gmra.mxu1 %vm62_vm0, %v162_v51 }
  0xf2   :  { %305 = vmatmul.msk.f32.gmra.mxu1 %vm62_vm0, %v163_v52 }
 0x157   :  { %v209_v54 = vpop.f32.mrf.mxu1 }
 0x158   :  { %v210_v60 = vadd.f32 %v209_v54, %v166_v53 }
 0x15a   :  { %v221_v1 = vmul.f32 0.01, %v210_v60 }
 0x15c   :  { %v225_v5 = vmax.f32 %v210_v60, %v221_v1 }
 0x15e   :  { %v246_v11 = vmul.f32 %v232_v0, %v225_v5 }
 0x15f   :  { %v212_v56 = vpop.f32.mrf.mxu1 }
 0x160   :  { %v213_v58 = vadd.f32 %v212_v56, %v170_v55 }
 0x162   :  { %v222_v62 = vmul.f32 0.01, %v213_v58 }
 0x164   :  { %v226_v3 = vmax.f32 %v213_v58, %v222_v62 }
 0x166   :  { %v247_v8 = vmul.f32 %v236_v4, %v226_v3 }
 0x167   :  { %v215_v61 = vpop.f32.mrf.mxu1 }
 0x168   :  { %v216_v63 = vadd.f32 %v215_v61, %v174_v59  ;;  %v250_v15 = vadd.f32 %v247_v8, %v246_v11 }
 0x16a   :  { %v223_v2 = vmul.f32 0.01, %v216_v63 }
 0x16c   :  { %v227_v6 = vmax.f32 %v216_v63, %v223_v2 }
 0x16e   :  { %v248_v12 = vmul.f32 %v240_v10, %v227_v6 }
 0x16f   :  { %v218_v7 = vpop.f32.mrf.mxu1 }
 0x170   :  { %v219_v9 = vadd.f32 %v218_v7, %v178_v57  ;;  %v251_v17 = vadd.f32 %v250_v15, %v248_v12 }
 0x172   :  { %v224_v13 = vmul.f32 0.01, %v219_v9 }
 0x174   :  { %v228_v16 = vmax.f32 %v219_v9, %v224_v13 }
 0x176   :  { %v249_v18 = vmul.f32 %v244_v14, %v228_v16 }
 0x178   :  { %v252_v19 = vadd.f32 %v251_v17, %v249_v18 }
 0x17a   :  { %v253_v20 = vrot.slane %v252_v19, 4 }
 0x17c   :  { %v254_v21 = vadd.f32 %v253_v20, %v252_v19 }
 0x17e   :  { %v255_v22 = vrot.slane %v254_v21, 2 }
 0x180   :  { %v256_v23 = vadd.f32 %v255_v22, %v254_v21 }
 0x182   :  { %v257_v24 = vrot.slane %v256_v23, 1 }
 0x184   :  { %v258_v26 = vadd.f32 %v257_v24, %v256_v23 }
 0x186   :  { %v264_v27 = vadd.f32 %v262_v25, %v258_v26 }
 0x188   :  { %265 = vst [vmem:[#allocation2] sm:$0x1] %v264_v27 }
 0x189   :  { %276 = dma.vmem_to_hbm [thread:$0]  %s272_s18, 16, %s274_s21, [#allocation3]  }
 0x18a   :  { %377 = dma.done.wait [#allocation3], 16  }
 0x18b   :  { %378 = vsyncadd [#allocation3], 4294967280 }
 0x18c   :  { %281 = vsyncpa [#allocation3], 1 }

</bundles_post_ra>
